<compile_context>
chip_gen: v5e
topology: v5e:2x2
jax: 0.10.0
libtpu: 0.0.40
codegen_flags: <defaults>
</compile_context>

<pallas_src>
import jax
import jax.numpy as jnp
from jax.experimental import pallas as pl
from jax.experimental.pallas import tpu as pltpu


# ----------------------------- kernels --------------------------------------

def _mlp2_kernel(x_ref, w1_ref, w2_ref, bias_ref, o_ref):
    """Two-matmul form (faithful to the module structure)."""
    x = x_ref[...].astype(jnp.bfloat16)
    # h = x @ W1^T  (W1 pre-transposed to (in_f, hid)); f32 accumulation.
    h = jnp.dot(x, w1_ref[...], preferred_element_type=jnp.float32)
    # Stage the intermediate through bf16: halves the VMEM read bandwidth of
    # the (tm, hid) LHS and keeps the 2nd matmul on the fast bf16 MXU path.
    h = h.astype(jnp.bfloat16)
    # o = h @ W2^T + fused_bias  (W2 pre-transposed to (hid, num)).
    o = jnp.dot(h, w2_ref[...], preferred_element_type=jnp.float32)
    o_ref[...] = (o + bias_ref[...]).astype(o_ref.dtype)


def _mlp1_kernel(x_ref, wc_ref, bias_ref, o_ref):
    """Collapsed single-matmul form: out = x @ (W2 @ W1)^T + fused_bias."""
    x = x_ref[...].astype(jnp.bfloat16)
    o = jnp.dot(x, wc_ref[...], preferred_element_type=jnp.float32)
    o_ref[...] = (o + bias_ref[...]).astype(o_ref.dtype)


# ----------------------------- setup ----------------------------------------

def prepare_params(w1, w2, *, collapse=True):
    """One-time parameter prep (NOT on the per-call hot path).

    w1: (hid, in_f), w2: (num, hid) -- native nn.Linear layout.
    Returns (mode, weights) where weights ends with the fused f32 bias.
    """
    w1 = jnp.asarray(w1, jnp.float32)
    w2 = jnp.asarray(w2, jnp.float32)
    # Exact in f32: (v2 - 0.5) @ W2^T == v2 @ W2^T - 0.5 * W2.sum(axis=1).
    fused_bias = (-0.5 * jnp.sum(w2, axis=1))[None, :]              # (1, num) f32
    if collapse:
        # Collapse the purely linear chain; compute in f32, then cast.
        wc_t = jnp.dot(w2, w1).T.astype(jnp.bfloat16)               # (in_f, num)
        return ("collapsed", (wc_t, fused_bias))
    w1_t = w1.T.astype(jnp.bfloat16)                                # (in_f, hid)
    w2_t = w2.T.astype(jnp.bfloat16)                                # (hid, num)
    return ("two_matmul", (w1_t, w2_t, fused_bias))


# ----------------------------- forward --------------------------------------

def model_forward(x, params, *, tm=512, vmem_limit_bytes=32 * 1024 * 1024):
    """Reproduces:
        v1 = flatten(x, 1); v2 = v1 @ W1^T; v3 = v2 - 0.5; out = v3 @ W2^T
    """
    mode, weights = params
    b = x.shape[0]
    xf = x.reshape(b, -1)                       # flatten stays in JAX (view-level)
    in_f = xf.shape[1]
    fused_bias = weights[-1]
    num = fused_bias.shape[1]

    if mode == "collapsed":
        kernel = _mlp1_kernel
        wc_t = weights[0]
        assert wc_t.shape == (in_f, num)
        flops = 2 * b * in_f * num
    else:
        kernel = _mlp2_kernel
        w1_t, w2_t = weights[0], weights[1]
        hid = w1_t.shape[1]
        assert w1_t.shape == (in_f, hid) and w2_t.shape == (hid, num)
        flops = 2 * b * (in_f * hid + hid * num)

    bytes_accessed = (xf.size * xf.dtype.itemsize
                      + sum(w.size * w.dtype.itemsize for w in weights)
                      + b * num * xf.dtype.itemsize)
    cost = pl.CostEstimate(flops=flops, transcendentals=0,
                           bytes_accessed=bytes_accessed)
    out_shape = jax.ShapeDtypeStruct((b, num), xf.dtype)

    if b % tm != 0 or b // tm < 2:
        # Small batch: no grid, everything VMEM-resident, no pipeline overhead.
        vmem = pltpu.MemorySpace.VMEM
        return pl.pallas_call(
            kernel,
            out_shape=out_shape,
            in_specs=[pl.BlockSpec(memory_space=vmem)] * (1 + len(weights)),
            out_specs=pl.BlockSpec(memory_space=vmem),
            cost_estimate=cost,
        )(xf, *weights)

    # Large batch: tile rows only (K and N stay whole -> no reduction axis,
    # no accumulator scratch). Weights use a constant index_map so Pallas
    # keeps them resident instead of re-DMAing them each step.
    in_specs = [pl.BlockSpec((tm, in_f), lambda i: (i, 0))]
    in_specs += [pl.BlockSpec(w.shape, lambda i: (0, 0)) for w in weights]
    return pl.pallas_call(
        kernel,
        out_shape=out_shape,
        grid=(b // tm,),
        in_specs=in_specs,
        out_specs=pl.BlockSpec((tm, num), lambda i: (i, 0)),
        compiler_params=pltpu.CompilerParams(
            dimension_semantics=("parallel",),      # shard batch across TCs (v7x)
            vmem_limit_bytes=vmem_limit_bytes,      # sized for v7x's 64 MiB VMEM
        ),
        cost_estimate=cost,
    )(xf, *weights)


# ----------------------------- test -----------------------------------------

if __name__ == "__main__":
    # Small shapes consistent with the module (Linear(in_f->hid), Linear(hid->num)),
    # kept as multiples of (8, 128) for clean TPU layouts.
    B, C, H, W = 8, 4, 8, 8            # flatten(x, 1) -> (8, 256)
    in_f = C * H * W                   # 256
    hid = 384
    num = 128

    key = jax.random.PRNGKey(0)
    kx, k1, k2, kb = jax.random.split(key, 4)

    x = jax.random.normal(kx, (B, C, H, W), dtype=jnp.float32)
    # Mimic nn.Linear's uniform(-1/sqrt(fan_in), 1/sqrt(fan_in)) init, bias=False.
    w1 = jax.random.uniform(k1, (hid, in_f), dtype=jnp.float32,
                            minval=-1.0 / (in_f ** 0.5), maxval=1.0 / (in_f ** 0.5))
    w2 = jax.random.uniform(k2, (num, hid), dtype=jnp.float32,
                            minval=-1.0 / (hid ** 0.5), maxval=1.0 / (hid ** 0.5))

    # One-time parameter prep (setup time, not hot path).
    params_2mm = jax.block_until_ready(prepare_params(w1, w2, collapse=False))
    params_col = jax.block_until_ready(prepare_params(w1, w2, collapse=True))

    # f32 reference (matches the PyTorch forward).
    v1 = x.reshape(B, -1)
    ref = (v1 @ w1.T - 0.5) @ w2.T

    # Small-batch (no-grid) path: both the faithful 2-matmul form and the
    # collapsed inference form. bf16 MXU inputs -> relaxed tolerance.
    out2 = jax.block_until_ready(model_forward(x, params_2mm))
    out1 = jax.block_until_ready(model_forward(x, params_col))
    assert out2.shape == (B, num) and out1.shape == (B, num)
    assert jnp.allclose(out2, ref, atol=5e-2, rtol=5e-2)
    assert jnp.allclose(out1, ref, atol=5e-2, rtol=5e-2)

    # Row-tiled (grid) path with a modestly larger batch, batch axis "parallel".
    Bb = 256
    xb = jax.random.normal(kb, (Bb, C, H, W), dtype=jnp.float32)
    refb = (xb.reshape(Bb, -1) @ w1.T - 0.5) @ w2.T
    outb = jax.block_until_ready(model_forward(xb, params_col, tm=128))
    assert outb.shape == (Bb, num)
    assert jnp.allclose(outb, refb, atol=5e-2, rtol=5e-2)

    print("KERNEL_OK")
</pallas_src>

<mosaic_0001>
module attributes {stable_mosaic.version = 11 : i64} {
  func.func @_mlp2_kernel(%arg0: memref<8x256xf32, #tpu.memory_space<vmem>>, %arg1: memref<256x384xbf16, #tpu.memory_space<vmem>>, %arg2: memref<384x128xbf16, #tpu.memory_space<vmem>>, %arg3: memref<1x128xf32, #tpu.memory_space<vmem>>, %arg4: memref<8x128xf32, #tpu.memory_space<vmem>>) attributes {dimension_semantics = [], scalar_prefetch = 0 : i64, scratch_operands = 0 : i64, tpu.core_type = #tpu.core_type<tc>} {
    %c0 = arith.constant 0 : index
    %c0_0 = arith.constant 0 : index
    %0 = vector.load %arg0[%c0, %c0_0] : memref<8x256xf32, #tpu.memory_space<vmem>>, vector<8x256xf32>
    %1 = arith.truncf %0 : vector<8x256xf32> to vector<8x256xbf16>
    %c0_1 = arith.constant 0 : index
    %c0_2 = arith.constant 0 : index
    %2 = vector.load %arg1[%c0_1, %c0_2] : memref<256x384xbf16, #tpu.memory_space<vmem>>, vector<256x384xbf16>
    %cst = arith.constant dense<0.000000e+00> : vector<8x384xf32>
    %3 = tpu.matmul %1, %2, %cst {dimension_numbers = #tpu.dot_dimension_numbers<[1], [0], [0], [1], [0, 0, 1, 1], [], []>} : vector<8x256xbf16>, vector<256x384xbf16>, vector<8x384xf32> -> vector<8x384xf32>
    %4 = arith.truncf %3 : vector<8x384xf32> to vector<8x384xbf16>
    %c0_3 = arith.constant 0 : index
    %c0_4 = arith.constant 0 : index
    %5 = vector.load %arg2[%c0_3, %c0_4] : memref<384x128xbf16, #tpu.memory_space<vmem>>, vector<384x128xbf16>
    %cst_5 = arith.constant dense<0.000000e+00> : vector<8x128xf32>
    %6 = tpu.matmul %4, %5, %cst_5 {dimension_numbers = #tpu.dot_dimension_numbers<[1], [0], [0], [1], [0, 0, 1, 1], [], []>} : vector<8x384xbf16>, vector<384x128xbf16>, vector<8x128xf32> -> vector<8x128xf32>
    %c0_6 = arith.constant 0 : index
    %c0_7 = arith.constant 0 : index
    %7 = vector.load %arg3[%c0_6, %c0_7] : memref<1x128xf32, #tpu.memory_space<vmem>>, vector<1x128xf32>
    %8 = vector.broadcast %7 : vector<1x128xf32> to vector<8x128xf32>
    %9 = arith.addf %6, %8 : vector<8x128xf32>
    %c0_8 = arith.constant 0 : index
    %c0_9 = arith.constant 0 : index
    %10 = vector.load %arg4[%c0_8, %c0_9] : memref<8x128xf32, #tpu.memory_space<vmem>>, vector<8x128xf32>
    tpu.vector_store %arg4[%c0_8, %c0_9], %9 {strides = array<i32>} : memref<8x128xf32, #tpu.memory_space<vmem>>, vector<8x128xf32>,
    return
  }
}

</mosaic_0001>

<bundles_post_ra>
// kernel: tpu_custom_call.1
= control target key start
LH: loop header
LB: loop body
LE: loop exit
PB: predicated region body
PF: predicated region fallthrough
CT: control target
= control target key end

     0   :  { %9 = vsyncpa [#allocation3], 0  ;;  %s1251_s0 = inlined_call_operand.hbm [shape: f32[8,256], index: 0, kind: input, shape index: {}]   ;;  %s1252_s1 = inlined_call_operand.hbm [shape: bf16[256,384], index: 1, kind: input, shape index: {}]   ;;  %s1253_s2 = inlined_call_operand.hbm [shape: bf16[384,128], index: 2, kind: input, shape index: {}]   ;;  %s1254_s3 = inlined_call_operand.vmem [shape: f32[1,128], index: 3, kind: input, shape index: {}]   ;;  %s1255_s4 = inlined_call_operand.hbm [shape: f32[8,128], index: 4, kind: output, shape index: {}]  }
   0x1   :  { %10 = vsyncpa [#allocation6], 0  ;;  %s27_s17 = sshll.u32 %s1252_s1, 4  ;;  %s28_s17 = int_to_ptr.hbm [resolvable:$true] %s27_s17 }
   0x2   :  { %11 = vsyncpa [#allocation4], 0  ;;  %s1193_s18 = smov [#allocation5]   ;;  %s17_s22 = sshll.u32 %s1251_s0, 4  ;;  %s18_s22 = int_to_ptr.hbm [resolvable:$true] %s17_s22 }
   0x3   :  { %s29_s19 = sshll.u32 %s1193_s18, 4  ;;  %s1194_s23 = smov 192   ;;  %s30_s19 = int_to_ptr.vmem [resolvable:$true] %s29_s19 }
   0x4   :  { %s1195_s24 = smov 12   ;;  %s1196_s25 = smov [#allocation2]  }
   0x5   :  { %35 = dma.hbm_to_vmem [thread:$0]  %s28_s17, 6144, %s30_s19, [#allocation6], %s1194_s23, %s1194_s23, %s1195_s24  }
   0x6   :  { %s19_s26 = sshll.u32 %s1196_s25, 4  ;;  %s40_s29 = sshll.u32 %s1253_s2, 4  ;;  %s20_s26 = int_to_ptr.vmem [resolvable:$true] %s19_s26  ;;  %s41_s29 = int_to_ptr.hbm [resolvable:$true] %s40_s29 }
   0x7   :  { %22 = dma.hbm_to_vmem [thread:$0]  %s18_s22, 256, %s20_s26, [#allocation3]  }
   0x8   :  { %s1197_s1 = smov [#allocation7]   ;;  %s1198_s5 = smov 64  }
   0x9   :  { %s42_s30 = sshll.u32 %s1197_s1, 4  ;;  %s1199_s6 = smov 4   ;;  %s43_s30 = int_to_ptr.vmem [resolvable:$true] %s42_s30 }
   0xa   :  { %48 = dma.hbm_to_vmem [thread:$0]  %s41_s29, 3072, %s43_s30, [#allocation6], %s1198_s5, %s1198_s5, %s1199_s6  }
   0xb   :  { %1187 = dma.done.wait [#allocation3], 256  }
   0xc   :  { %1188 = vsyncadd [#allocation3], 4294967040 }
   0xd   :  { %1189 = dma.done.wait [#allocation6], 9216  }
   0xe   :  { %1190 = vsyncadd [#allocation6], 4294958080  ;;  %v808_v0 = vld [vmem:[#allocation5 + $0xa8] sm:$0xf]  ;;  %v1032_v1 = vld [vmem:[#allocation5 + $0xb0] sm:$0xf0] }
   0xf   :  { %v904_v2 = vld [vmem:[#allocation5 + $0x168] sm:$0xf]  ;;  %v809_v3 = vor.u32 %v1032_v1, %v808_v0  ;;  %v1056_v4 = vld [vmem:[#allocation5 + $0x170] sm:$0xf0]  ;;  %v796_v5 = vld [vmem:[#allocation5 + $0x90] sm:$0xf] }
  0x10   :  { %v1029_v6 = vld [vmem:[#allocation5 + $0x98] sm:$0xf0]  ;;  %v905_v7 = vor.u32 %v1056_v4, %v904_v2  ;;  %v892_v8 = vld [vmem:[#allocation5 + $0x150] sm:$0xf]  ;;  %v784_v11 = vld [vmem:[#allocation5 + $0x78] sm:$0xf] }
  0x11   :  { %v1053_v9 = vld [vmem:[#allocation5 + $0x158] sm:$0xf0]  ;;  %387 = vmatpush.bf16.msra.mxu0 %v809_v3  ;;  %v797_v10 = vor.u32 %v1029_v6, %v796_v5  ;;  %v1026_v12 = vld [vmem:[#allocation5 + $0x80] sm:$0xf0]  ;;  %v1031_v14 = vld [vmem:[#allocation5 + $0xac] sm:$0xf] }
  0x12   :  { %400 = vmatpush.bf16.msra.mxu1 %v905_v7  ;;  %v893_v13 = vor.u32 %v1053_v9, %v892_v8  ;;  %v810_v15 = vld [vmem:[#allocation5 + $0xb4] sm:$0xf0]  ;;  %v1055_v16 = vld [vmem:[#allocation5 + $0x16c] sm:$0xf]  ;;  %v1050_v18 = vld [vmem:[#allocation5 + $0x140] sm:$0xf0]  ;;  %v785_v23 = vor.u32 %v1026_v12, %v784_v11 }
  0x13   :  { %v880_v17 = vld [vmem:[#allocation5 + $0x138] sm:$0xf]  ;;  %v813_v19 = vor.u32 %v1031_v14, %v810_v15  ;;  %v1028_v22 = vld [vmem:[#allocation5 + $0x94] sm:$0xf]  ;;  %v798_v24 = vld [vmem:[#allocation5 + $0x9c] sm:$0xf0] }
  0x14   :  { %v906_v20 = vld [vmem:[#allocation5 + $0x174] sm:$0xf0]  ;;  %v1052_v25 = vld [vmem:[#allocation5 + $0x154] sm:$0xf]  ;;  %v894_v26 = vld [vmem:[#allocation5 + $0x15c] sm:$0xf0]  ;;  %v881_v27 = vor.u32 %v1050_v18, %v880_v17  ;;  %v801_v31 = vor.u32 %v1028_v22, %v798_v24 }
  0x15   :  { %v909_v21 = vor.u32 %v1055_v16, %v906_v20  ;;  %388 = vmatpush.bf16.msra.mxu0 %v797_v10  ;;  %413 = vmatpush.bf16.msra.mxu2 %v813_v19  ;;  %v772_v28 = vld [vmem:[#allocation5 + $0x60] sm:$0xf]  ;;  %v1023_v29 = vld [vmem:[#allocation5 + $0x68] sm:$0xf0]  ;;  %v897_v32 = vor.u32 %v1052_v25, %v894_v26  ;;  %v1025_v34 = vld [vmem:[#allocation5 + $0x7c] sm:$0xf] }
  0x16   :  { %401 = vmatpush.bf16.msra.mxu1 %v893_v13  ;;  %v868_v30 = vld [vmem:[#allocation5 + $0x120] sm:$0xf]  ;;  %v1047_v33 = vld [vmem:[#allocation5 + $0x128] sm:$0xf0]  ;;  %v786_v35 = vld [vmem:[#allocation5 + $0x84] sm:$0xf0]  ;;  %v773_v38 = vor.u32 %v1023_v29, %v772_v28 }
  0x17   :  { %426 = vmatpush.bf16.msra.mxu3 %v909_v21  ;;  %v1049_v36 = vld [vmem:[#allocation5 + $0x13c] sm:$0xf]  ;;  %v882_v37 = vld [vmem:[#allocation5 + $0x144] sm:$0xf0]  ;;  %v1020_v40 = vld [vmem:[#allocation5 + $0x50] sm:$0xf0]  ;;  %v789_v41 = vor.u32 %v1025_v34, %v786_v35  ;;  %v869_v42 = vor.u32 %v1047_v33, %v868_v30 }
  0x18   :  { %v760_v39 = vld [vmem:[#allocation5 + $0x48] sm:$0xf]  ;;  %v885_v44 = vor.u32 %v1049_v36, %v882_v37  ;;  %v1022_v45 = vld [vmem:[#allocation5 + $0x64] sm:$0xf]  ;;  %v774_v46 = vld [vmem:[#allocation5 + $0x6c] sm:$0xf0] }
  0x19   :  { %389 = vmatpush.bf16.msra.mxu0 %v785_v23  ;;  %414 = vmatpush.bf16.msra.mxu2 %v801_v31  ;;  %v856_v43 = vld [vmem:[#allocation5 + $0x108] sm:$0xf]  ;;  %v1044_v47 = vld [vmem:[#allocation5 + $0x110] sm:$0xf0]  ;;  %v1046_v48 = vld [vmem:[#allocation5 + $0x124] sm:$0xf]  ;;  %v761_v50 = vor.u32 %v1020_v40, %v760_v39  ;;  %v777_v53 = vor.u32 %v1022_v45, %v774_v46 }
  0x1a   :  { %402 = vmatpush.bf16.msra.mxu1 %v881_v27  ;;  %v870_v49 = vld [vmem:[#allocation5 + $0x12c] sm:$0xf0]  ;;  %v1017_v52 = vld [vmem:[#allocation5 + $0x38] sm:$0xf0]  ;;  %v857_v54 = vor.u32 %v1044_v47, %v856_v43  ;;  %v1019_v57 = vld [vmem:[#allocation5 + $0x4c] sm:$0xf] }
  0x1b   :  { %427 = vmatpush.bf16.msra.mxu3 %v897_v32  ;;  %v748_v51 = vld [vmem:[#allocation5 + $0x30] sm:$0xf]  ;;  %v873_v56 = vor.u32 %v1046_v48, %v870_v49  ;;  %v762_v58 = vld [vmem:[#allocation5 + $0x54] sm:$0xf0]  ;;  %v1041_v59 = vld [vmem:[#allocation5 + $0xf8] sm:$0xf0] }
  0x1c   :  { %v844_v55 = vld [vmem:[#allocation5 + $0xf0] sm:$0xf]  ;;  %v1043_v60 = vld [vmem:[#allocation5 + $0x10c] sm:$0xf]  ;;  %v858_v61 = vld [vmem:[#allocation5 + $0x114] sm:$0xf0]  ;;  %v749_v62 = vor.u32 %v1017_v52, %v748_v51  ;;  %v765_v1 = vor.u32 %v1019_v57, %v762_v58 }
  0x1d   :  { %390 = vmatpush.bf16.msra.mxu0 %v773_v38  ;;  %415 = vmatpush.bf16.msra.mxu2 %v789_v41  ;;  %v736_v63 = vld [vmem:[#allocation5 + $0x18] sm:$0xf]  ;;  %v1014_v0 = vld [vmem:[#allocation5 + $0x20] sm:$0xf0]  ;;  %v845_v2 = vor.u32 %v1041_v59, %v844_v55  ;;  %v861_v4 = vor.u32 %v1043_v60, %v858_v61  ;;  %v1016_v5 = vld [vmem:[#allocation5 + $0x34] sm:$0xf] }
  0x1e   :  { %403 = vmatpush.bf16.msra.mxu1 %v869_v42  ;;  %v832_v3 = vld [vmem:[#allocation5 + $0xd8] sm:$0xf]  ;;  %v750_v6 = vld [vmem:[#allocation5 + $0x3c] sm:$0xf0]  ;;  %v1038_v7 = vld [vmem:[#allocation5 + $0xe0] sm:$0xf0]  ;;  %v737_v10 = vor.u32 %v1014_v0, %v736_v63 }
  0x1f   :  { %428 = vmatpush.bf16.msra.mxu3 %v885_v44  ;;  %v1040_v8 = vld [vmem:[#allocation5 + $0xf4] sm:$0xf]  ;;  %v846_v9 = vld [vmem:[#allocation5 + $0xfc] sm:$0xf0]  ;;  %v1011_v12 = vld [vmem:[#allocation5 + $0x8] sm:$0xf0]  ;;  %v753_v14 = vor.u32 %v1016_v5, %v750_v6  ;;  %v833_v15 = vor.u32 %v1038_v7, %v832_v3 }
  0x20   :  { %v724_v11 = vld [vmem:[#allocation5] sm:$0xf]  ;;  %v1035_v16 = vld [vmem:[#allocation5 + $0xc8] sm:$0xf0]  ;;  %v849_v17 = vor.u32 %v1040_v8, %v846_v9  ;;  %v1013_v18 = vld [vmem:[#allocation5 + $0x1c] sm:$0xf] }
  0x21   :  { %391 = vmatpush.bf16.msra.mxu0 %v761_v50  ;;  %416 = vmatpush.bf16.msra.mxu2 %v777_v53  ;;  %v820_v13 = vld [vmem:[#allocation5 + $0xc0] sm:$0xf]  ;;  %v738_v19 = vld [vmem:[#allocation5 + $0x24] sm:$0xf0]  ;;  %v816_v20 = vld [vmem:[#allocation5 + $0xb0] sm:$0xf]  ;;  %v725_v26 = vor.u32 %v1011_v12, %v724_v11 }
  0x22   :  { %404 = vmatpush.bf16.msra.mxu1 %v857_v54  ;;  %v1033_v21 = vld [vmem:[#allocation5 + $0xb8] sm:$0xf0]  ;;  %v912_v22 = vld [vmem:[#allocation5 + $0x170] sm:$0xf]  ;;  %v834_v25 = vld [vmem:[#allocation5 + $0xe4] sm:$0xf0]  ;;  %v741_v27 = vor.u32 %v1013_v18, %v738_v19  ;;  %v821_v29 = vor.u32 %v1035_v16, %v820_v13 }
  0x23   :  { %429 = vmatpush.bf16.msra.mxu3 %v873_v56  ;;  %v1057_v23 = vld [vmem:[#allocation5 + $0x178] sm:$0xf0]  ;;  %v63_v28 = vld [vmem:[#allocation2] sm:$0xff]  ;;  %v817_v30 = vor.u32 %v1033_v21, %v816_v20  ;;  %v1010_v32 = vld [vmem:[#allocation5 + $0x4] sm:$0xf]  ;;  %s1200_s7 = smov [#allocation8]  }
  0x24   :  { %v1037_v24 = vld [vmem:[#allocation5 + $0xdc] sm:$0xf]  ;;  %v726_v33 = vld [vmem:[#allocation5 + $0xc] sm:$0xf0]  ;;  %v913_v34 = vor.u32 %v1057_v23, %v912_v22  ;;  %v804_v36 = vld [vmem:[#allocation5 + $0x98] sm:$0xf]  ;;  %v1235_v40 = vpack.c.bf16 %v63_v28, %v63_v28 }
  0x25   :  { %392 = vmatpush.bf16.msra.mxu0 %v749_v62  ;;  %417 = vmatpush.bf16.msra.mxu2 %v765_v1  ;;  %v64_v31 = vld [vmem:[#allocation2 + $0x8] sm:$0xff]  ;;  %v837_v35 = vor.u32 %v1037_v24, %v834_v25  ;;  %v1030_v37 = vld [vmem:[#allocation5 + $0xa0] sm:$0xf0]  ;;  %v822_v42 = vld [vmem:[#allocation5 + $0xcc] sm:$0xf0]  ;;  %v729_v44 = vor.u32 %v1010_v32, %v726_v33  ;;  %s709_s8 = sshll.u32 %s1200_s7, 4  ;;  %s710_s8 = int_to_ptr.vmem [resolvable:$true] %s709_s8 }
  0x26   :  { %405 = vmatpush.bf16.msra.mxu1 %v845_v2  ;;  %v900_v38 = vld [vmem:[#allocation5 + $0x158] sm:$0xf]  ;;  %v1054_v39 = vld [vmem:[#allocation5 + $0x160] sm:$0xf0]  ;;  %v1237_v43 = vpack.c.bf16 %v64_v31, %v64_v31  ;;  %v805_v45 = vor.u32 %v1030_v37, %v804_v36  ;;  %v792_v49 = vld [vmem:[#allocation5 + $0x80] sm:$0xf] }
  0x27   :  { %430 = vmatpush.bf16.msra.mxu3 %v861_v4  ;;  %v1034_v41 = vld [vmem:[#allocation5 + $0xc4] sm:$0xf]  ;;  %v1065_v46 = vld [vmem:[#allocation7 + $0x38] sm:$0xff]  ;;  %v901_v47 = vor.u32 %v1054_v39, %v900_v38  ;;  %v1027_v50 = vld [vmem:[#allocation5 + $0x88] sm:$0xf0]  ;;  %s711_s11 = sshll.u32 %s1255_s4, 4  ;;  %s712_s11 = int_to_ptr.hbm [resolvable:$true] %s711_s11 }
  0x28   :  { %v825_v48 = vor.u32 %v1034_v41, %v822_v42  ;;  %v888_v51 = vld [vmem:[#allocation5 + $0x140] sm:$0xf]  ;;  %v1051_v52 = vld [vmem:[#allocation5 + $0x148] sm:$0xf0]  ;;  %v1073_v53 = vld [vmem:[#allocation7 + $0x78] sm:$0xff]  ;;  %v793_v54 = vor.u32 %v1027_v50, %v792_v49 }
  0x29   :  { %393 = vmatpush.bf16.msra.mxu0 %v737_v10  ;;  %418 = vmatpush.bf16.msra.mxu2 %v753_v14  ;;  %v889_v55 = vor.u32 %v1051_v52, %v888_v51  ;;  %v780_v56 = vld [vmem:[#allocation5 + $0x68] sm:$0xf]  ;;  %v1024_v57 = vld [vmem:[#allocation5 + $0x70] sm:$0xf0]  ;;  %v768_v0 = vld [vmem:[#allocation5 + $0x50] sm:$0xf] }
  0x2a   :  { %406 = vmatpush.bf16.msra.mxu1 %v833_v15  ;;  %v1064_v58 = vld [vmem:[#allocation7 + $0x30] sm:$0xff]  ;;  %v876_v59 = vld [vmem:[#allocation5 + $0x128] sm:$0xf]  ;;  %v781_v62 = vor.u32 %v1024_v57, %v780_v56  ;;  %v1021_v1 = vld [vmem:[#allocation5 + $0x58] sm:$0xf0] }
  0x2b   :  { %431 = vmatpush.bf16.msra.mxu3 %v849_v17  ;;  %v1048_v60 = vld [vmem:[#allocation5 + $0x130] sm:$0xf0]  ;;  %v1063_v2 = vld [vmem:[#allocation7 + $0x28] sm:$0xff]  ;;  %v864_v3 = vld [vmem:[#allocation5 + $0x110] sm:$0xf]  ;;  %v769_v6 = vor.u32 %v1021_v1, %v768_v0 }
  0x2c   :  { %v1072_v61 = vld [vmem:[#allocation7 + $0x70] sm:$0xff]  ;;  %v877_v63 = vor.u32 %v1048_v60, %v876_v59  ;;  %v1045_v4 = vld [vmem:[#allocation5 + $0x118] sm:$0xf0]  ;;  %v1071_v5 = vld [vmem:[#allocation7 + $0x68] sm:$0xff] }
  0x2d   :  { %394 = vmatpush.bf16.msra.mxu0 %v725_v26  ;;  %419 = vmatpush.bf16.msra.mxu2 %v741_v27  ;;  %v865_v7 = vor.u32 %v1045_v4, %v864_v3  ;;  %v756_v8 = vld [vmem:[#allocation5 + $0x38] sm:$0xf]  ;;  %v1018_v9 = vld [vmem:[#allocation5 + $0x40] sm:$0xf0]  ;;  %v744_v16 = vld [vmem:[#allocation5 + $0x20] sm:$0xf] }
  0x2e   :  { %407 = vmatpush.bf16.msra.mxu1 %v821_v29  ;;  %v1062_v10 = vld [vmem:[#allocation7 + $0x20] sm:$0xff]  ;;  %v852_v11 = vld [vmem:[#allocation5 + $0xf8] sm:$0xf]  ;;  %v757_v14 = vor.u32 %v1018_v9, %v756_v8  ;;  %v1015_v17 = vld [vmem:[#allocation5 + $0x28] sm:$0xf0] }
  0x2f   :  { %432 = vmatpush.bf16.msra.mxu3 %v837_v35  ;;  %v1042_v12 = vld [vmem:[#allocation5 + $0x100] sm:$0xf0]  ;;  %v1061_v18 = vld [vmem:[#allocation7 + $0x18] sm:$0xff]  ;;  %v840_v19 = vld [vmem:[#allocation5 + $0xe0] sm:$0xf]  ;;  %v745_v21 = vor.u32 %v1015_v17, %v744_v16 }
  0x30   :  { %395 = vmatmul.bf16.vlgmr.msra.gmra.mxu0 %v1235_v40  ;;  %v1070_v13 = vld [vmem:[#allocation7 + $0x60] sm:$0xff]  ;;  %v853_v15 = vor.u32 %v1042_v12, %v852_v11  ;;  %v1039_v20 = vld [vmem:[#allocation5 + $0xe8] sm:$0xf0]  ;;  %v732_v23 = vld [vmem:[#allocation5 + $0x8] sm:$0xf] }
  0x31   :  { %439 = vmatpush.bf16.msrb.mxu0 %v817_v30  ;;  %408 = vmatmul.bf16.vlgmr.msra.gmra.mxu1 %v1237_v43  ;;  %v841_v22 = vor.u32 %v1039_v20, %v840_v19  ;;  %v1012_v24 = vld [vmem:[#allocation5 + $0x10] sm:$0xf0]  ;;  %v828_v26 = vld [vmem:[#allocation5 + $0xc8] sm:$0xf]  ;;  %v1081_v31 = vld [vmem:[#allocation7 + $0xb8] sm:$0xff] }
  0x32   :  { %452 = vmatpush.bf16.msrb.mxu1 %v913_v34  ;;  %420 = vmatpush.bf16.msra.mxu2 %v729_v44  ;;  %v1060_v25 = vld [vmem:[#allocation7 + $0x10] sm:$0xff]  ;;  %v733_v28 = vor.u32 %v1012_v24, %v732_v23  ;;  %v1059_v30 = vld [vmem:[#allocation7 + $0x8] sm:$0xff]  ;;  %v1069_v32 = vld [vmem:[#allocation7 + $0x58] sm:$0xff] }
  0x33   :  { %433 = vmatpush.bf16.msra.mxu3 %v825_v48  ;;  %v1036_v27 = vld [vmem:[#allocation5 + $0xd0] sm:$0xf0]  ;;  %v1058_v33 = vld [vmem:[#allocation7] sm:$0xff]  ;;  %v1079_v36 = vld [vmem:[#allocation7 + $0xa8] sm:$0xff] }
  0x34   :  { %v829_v29 = vor.u32 %v1036_v27, %v828_v26  ;;  %v1080_v34 = vld [vmem:[#allocation7 + $0xb0] sm:$0xff]  ;;  %v1067_v37 = vld [vmem:[#allocation7 + $0x48] sm:$0xff]  ;;  %v1078_v38 = vld [vmem:[#allocation7 + $0xa0] sm:$0xff] }
  0x35   :  { %440 = vmatpush.bf16.msrb.mxu0 %v805_v45  ;;  %421 = vmatmul.bf16.vlgmr.msra.gmra.mxu2 %v1235_v40  ;;  %v1068_v35 = vld [vmem:[#allocation7 + $0x50] sm:$0xff]  ;;  %v1066_v39 = vld [vmem:[#allocation7 + $0x40] sm:$0xff]  ;;  %v1077_v41 = vld [vmem:[#allocation7 + $0x98] sm:$0xff] }
  0x36   :  { %664 = vmatpush.bf16.msrb.mxu2 %v1065_v46  ;;  %453 = vmatpush.bf16.msrb.mxu1 %v901_v47  ;;  %v1075_v42 = vld [vmem:[#allocation7 + $0x88] sm:$0xff]  ;;  %v1090_v1 = vld [vmem:[%s1254_s3] ss:$0 sm:$0xff] }
  0x37   :  { %677 = vmatpush.bf16.msrb.mxu3 %v1073_v53 }
  0x38   :  { %434 = vmatmul.bf16.vlgmr.msra.gmra.mxu3 %v1237_v43 }
  0x39   :  { %441 = vmatpush.bf16.msrb.mxu0 %v793_v54 }
  0x3a   :  { %454 = vmatpush.bf16.msrb.mxu1 %v889_v55  ;;  %665 = vmatpush.bf16.msrb.mxu2 %v1064_v58 }
  0x3b   :  { %678 = vmatpush.bf16.msrb.mxu3 %v1072_v61 }
  0x3d   :  { %442 = vmatpush.bf16.msrb.mxu0 %v781_v62 }
  0x3e   :  { %455 = vmatpush.bf16.msrb.mxu1 %v877_v63  ;;  %666 = vmatpush.bf16.msrb.mxu2 %v1063_v2 }
  0x3f   :  { %679 = vmatpush.bf16.msrb.mxu3 %v1071_v5 }
  0x41   :  { %443 = vmatpush.bf16.msrb.mxu0 %v769_v6 }
  0x42   :  { %456 = vmatpush.bf16.msrb.mxu1 %v865_v7  ;;  %667 = vmatpush.bf16.msrb.mxu2 %v1062_v10 }
  0x43   :  { %680 = vmatpush.bf16.msrb.mxu3 %v1070_v13 }
  0x45   :  { %444 = vmatpush.bf16.msrb.mxu0 %v757_v14 }
  0x46   :  { %457 = vmatpush.bf16.msrb.mxu1 %v853_v15  ;;  %668 = vmatpush.bf16.msrb.mxu2 %v1061_v18 }
  0x47   :  { %681 = vmatpush.bf16.msrb.mxu3 %v1069_v32 }
  0x49   :  { %445 = vmatpush.bf16.msrb.mxu0 %v745_v21 }
  0x4a   :  { %458 = vmatpush.bf16.msrb.mxu1 %v841_v22  ;;  %669 = vmatpush.bf16.msrb.mxu2 %v1060_v25 }
  0x4b   :  { %682 = vmatpush.bf16.msrb.mxu3 %v1068_v35 }
  0x4d   :  { %446 = vmatpush.bf16.msrb.mxu0 %v733_v28 }
  0x4e   :  { %459 = vmatpush.bf16.msrb.mxu1 %v829_v29  ;;  %670 = vmatpush.bf16.msrb.mxu2 %v1059_v30 }
  0x4f   :  { %683 = vmatpush.bf16.msrb.mxu3 %v1067_v37 }
  0x50   :  { %447 = vmatmul.bf16.vlgmr.msrb.gmra.mxu0 %v1235_v40  ;;  %v1076_v40 = vld [vmem:[#allocation7 + $0x90] sm:$0xff] }
  0x51   :  { %690 = vmatpush.bf16.msra.mxu0 %v1081_v31  ;;  %460 = vmatmul.bf16.vlgmr.msrb.gmra.mxu1 %v1237_v43  ;;  %v1074_v43 = vld [vmem:[#allocation7 + $0x80] sm:$0xff] }
  0x52   :  { %671 = vmatpush.bf16.msrb.mxu2 %v1058_v33 }
  0x53   :  { %684 = vmatpush.bf16.msrb.mxu3 %v1066_v39 }
  0x55   :  { %691 = vmatpush.bf16.msra.mxu0 %v1080_v34 }
  0x59   :  { %692 = vmatpush.bf16.msra.mxu0 %v1079_v36 }
  0x5d   :  { %693 = vmatpush.bf16.msra.mxu0 %v1078_v38 }
  0x61   :  { %694 = vmatpush.bf16.msra.mxu0 %v1077_v41 }
  0x65   :  { %695 = vmatpush.bf16.msra.mxu0 %v1076_v40 }
  0x69   :  { %696 = vmatpush.bf16.msra.mxu0 %v1075_v42 }
  0x6d   :  { %697 = vmatpush.bf16.msra.mxu0 %v1074_v43 }
  0xad   :  { %v396_v44 = vpop.f32.mrf.mxu0 }
  0xae   :  { %v409_v45 = vpop.f32.mrf.mxu1 }
  0xaf   :  { %v410_v46 = vadd.f32 %v409_v45, %v396_v44 }
  0xb1   :  { %v465_v47 = vpack.c.bf16 %v410_v46, %v410_v46 }
  0xb3   :  { %672 = vmatmul.bf16.vlgmr.msrb.gmra.mxu2 %v465_v47 }
  0xb5   :  { %v398_v48 = vpop.f32.mrf.mxu0 }
  0xb6   :  { %v411_v49 = vpop.f32.mrf.mxu1 }
  0xb8   :  { %v422_v50 = vpop.f32.mrf.mxu2 }
  0xbb   :  { %v435_v51 = vpop.f32.mrf.mxu3 }
  0xbc   :  { %v436_v52 = vadd.f32 %v435_v51, %v422_v50 }
  0xbe   :  { %v466_v53 = vpack.c.bf16 %v436_v52, %v436_v52 }
  0xc0   :  { %685 = vmatmul.bf16.vlgmr.msrb.gmra.mxu3 %v466_v53  ;;  %v424_v54 = vpop.f32.mrf.mxu2 }
  0xc3   :  { %v437_v55 = vpop.f32.mrf.mxu3 }
  0xcd   :  { %v448_v56 = vpop.f32.mrf.mxu0 }
  0xce   :  { %v461_v57 = vpop.f32.mrf.mxu1 }
  0xcf   :  { %v462_v58 = vadd.f32 %v461_v57, %v448_v56 }
  0xd1   :  { %v467_v59 = vpack.c.bf16 %v462_v58, %v462_v58 }
  0xd3   :  { %698 = vmatmul.bf16.vlgmr.msra.gmra.mxu0 %v467_v59 }
  0xd5   :  { %v450_v60 = vpop.f32.mrf.mxu0 }
  0xd6   :  { %v463_v61 = vpop.f32.mrf.mxu1 }
 0x136   :  { %v673_v62 = vpop.f32.mrf.mxu2 }
 0x137   :  { %v674_v2 = vadd.f32 %v1090_v1, %v673_v62 }
 0x13e   :  { %v675_v63 = vpop.f32.mrf.mxu2 }
 0x143   :  { %v686_v0 = vpop.f32.mrf.mxu3 }
 0x144   :  { %v687_v4 = vadd.f32 %v686_v0, %v674_v2 }
 0x14b   :  { %v688_v3 = vpop.f32.mrf.mxu3 }
 0x150   :  { %v699_v5 = vpop.f32.mrf.mxu0 }
 0x151   :  { %v700_v6 = vadd.f32 %v699_v5, %v687_v4 }
 0x153   :  { %703 = vst [vmem:[#allocation8] sm:$0xff] %v700_v6 }
 0x154   :  { %714 = dma.vmem_to_hbm [thread:$0]  %s710_s8, 128, %s712_s11, [#allocation4]  }
 0x158   :  { %v701_v7 = vpop.f32.mrf.mxu0 }
 0x159   :  { %1191 = dma.done.wait [#allocation4], 128  }
 0x15a   :  { %1192 = vsyncadd [#allocation4], 4294967168 }
 0x15b   :  { %719 = vsyncpa [#allocation3], 1 }
 0x15c   :  { %720 = vsyncpa [#allocation6], 1 }
 0x15d   :  { %721 = vsyncpa [#allocation4], 1 }

</bundles_post_ra>
